<compile_context>
chip_gen: v6e
topology: v6e:2x2x1
jax: 0.10.0
libtpu: 0.0.40
codegen_flags: <defaults>
</compile_context>

<pallas_src>
import jax
import jax.numpy as jnp
from jax import lax
from jax.experimental import pallas as pl
from jax.experimental.pallas import tpu as pltpu

_LANE = 128
_SUBLANE = 8


def _label_generator_kernel(x_ref, a_ref, bias_ref, map_ref, out_ref):
    # score_k = x @ (-2 A) + (2 m A + ||c_k||^2);  argmin_k score == KMeans label.
    score = jnp.dot(x_ref[...], a_ref[...],
                    preferred_element_type=jnp.float32) + bias_ref[...]     # (TB, Kp)

    kp = score.shape[-1]
    idx = lax.broadcasted_iota(jnp.int32, score.shape, 1)                   # (TB, Kp)
    min_s = jnp.min(score, axis=-1, keepdims=True)                          # (TB, 1)
    # First-index tie-break, identical to torch / numpy argmin.
    label = jnp.min(jnp.where(score <= min_s, idx, kp),
                    axis=-1, keepdims=True)                                 # (TB, 1)

    # map_dict lookup emitted lane-dense: (1, Kp) x (TB, Kp) contracted on Kp
    # -> (1, TB).  Map values are small class ids, exact in f32.
    onehot = (idx == label).astype(jnp.float32)                             # (TB, Kp)
    targets = lax.dot_general(map_ref[...], onehot,
                              dimension_numbers=(((1,), (1,)), ((), ())),
                              preferred_element_type=jnp.float32)           # (1, TB)
    out_ref[...] = targets.astype(jnp.int32)


def pack_label_generator_params(pca_mean, pca_components, cluster_centers,
                                map_arr):
    """One-time packing at model-load: fuse PCA + centers, pad K to a lane tile."""
    w = jnp.asarray(pca_components, jnp.float32)          # (C, D)
    c = jnp.asarray(cluster_centers, jnp.float32)         # (K, C)
    m = jnp.asarray(pca_mean, jnp.float32)                # (D,)
    mp = jnp.asarray(map_arr, jnp.float32)                # (K,)

    k = c.shape[0]
    d = w.shape[1]
    kp = max(_LANE, ((k + _LANE - 1) // _LANE) * _LANE)

    a = w.T @ c.T                                         # (D, K): column k = W^T c_k
    bias = 2.0 * (m @ a) + jnp.sum(c * c, axis=-1)        # (K,)

    neg2a = jnp.zeros((d, kp), jnp.float32).at[:, :k].set(-2.0 * a)
    # Padded clusters get a huge score so they never win the argmin.
    bias_row = jnp.full((1, kp), 1e30, jnp.float32).at[0, :k].set(bias)
    map_row = jnp.zeros((1, kp), jnp.float32).at[0, :k].set(mp)
    return {"neg2a": neg2a, "bias": bias_row, "map": map_row, "d": d, "kp": kp}


def label_generator_forward(x, packed, *, tb=128):
    """x: (D,) or (B, D). 1-D input mirrors forward(): returns a scalar target.
    2-D input returns a (B,) int32 vector of mapped targets."""
    neg2a, bias, map_row = packed["neg2a"], packed["bias"], packed["map"]
    d, kp = packed["d"], packed["kp"]

    # Batch tile: multiple of 8 sublanes; 128 keeps the (1, TB) output lane-dense.
    tb = max(_LANE, ((tb + _SUBLANE - 1) // _SUBLANE) * _SUBLANE)

    squeeze = x.ndim == 1
    if squeeze:
        x = x[None, :]                                    # mirrors x.unsqueeze_(0)
    b = x.shape[0]
    b_pad = ((b + tb - 1) // tb) * tb
    x = jnp.asarray(x, jnp.float32)
    if b_pad != b:
        x = jnp.pad(x, ((0, b_pad - b), (0, 0)))

    flops = 2 * b_pad * d * kp + 2 * b_pad * kp
    bytes_accessed = 4 * (b_pad * d + neg2a.size + bias.size + map_row.size
                          + b_pad)

    out = pl.pallas_call(
        _label_generator_kernel,
        out_shape=jax.ShapeDtypeStruct((1, b_pad), jnp.int32),
        grid=(b_pad // tb,),
        in_specs=[
            pl.BlockSpec((tb, d), lambda i: (i, 0)),      # x tile (per grid step)
            pl.BlockSpec((d, kp), lambda i: (0, 0)),      # fused PCA/centers, resident
            pl.BlockSpec((1, kp), lambda i: (0, 0)),      # bias row, resident
            pl.BlockSpec((1, kp), lambda i: (0, 0)),      # cluster->target map, resident
        ],
        out_specs=pl.BlockSpec((1, tb), lambda i: (0, i)),
        compiler_params=pltpu.CompilerParams(
            dimension_semantics=("parallel",)),
        cost_estimate=pl.CostEstimate(flops=flops, transcendentals=0,
                                      bytes_accessed=bytes_accessed),
    )(x, neg2a, bias, map_row)

    out = out[0, :b]
    return out[0] if squeeze else out                     # scalar mirrors .item() lookup


def _reference_forward(x, pca_mean, pca_components, cluster_centers, map_arr):
    if x.ndim == 1:
        x = x[None, :]
    z = (x - pca_mean[None, :]) @ pca_components.T
    dist = jnp.sum((z[:, None, :] - cluster_centers[None, :, :]) ** 2, axis=-1)
    lab = jnp.argmin(dist, axis=-1)
    return map_arr[lab]


if __name__ == "__main__":
    # Small, deterministic synthetic parameters (no checkpoint / cuML loading).
    D = 64      # feature / hidden dim
    C = 16      # PCA n_components
    K = 20      # KMeans n_clusters (align_old maps i -> i + 80)
    B = 2       # demo batch (forward() itself is the B=1 path)

    key = jax.random.PRNGKey(0)
    k_x, k_mean, k_comp, k_cent = jax.random.split(key, 4)

    x_batch = jax.random.normal(k_x, (B, D), dtype=jnp.float32)
    x_single = x_batch[0]
    pca_mean = jax.random.normal(k_mean, (D,), dtype=jnp.float32) * 0.1
    pca_components = jax.random.normal(k_comp, (C, D), dtype=jnp.float32)
    cluster_centers = jax.random.normal(k_cent, (K, C), dtype=jnp.float32)
    map_arr = jnp.arange(K, dtype=jnp.int32) + 80   # align_old init: i -> i + 80

    # TODO(synk): `projector` is an arbitrary external nn.Module; the module
    # forbids projector together with the PCA downsampler, so projector=None here.

    # One-time parameter packing (model-load time, NOT per forward call).
    packed = jax.tree.map(jax.block_until_ready,
                          pack_label_generator_params(
                              pca_mean, pca_components, cluster_centers, map_arr))

    # Single-sample path (exact forward() semantics).
    tgt_single = jax.block_until_ready(label_generator_forward(x_single, packed))
    # Batched path (same kernel, grid over B).
    tgt_batch = jax.block_until_ready(label_generator_forward(x_batch, packed))

    ref_single = _reference_forward(x_single, pca_mean, pca_components,
                                    cluster_centers, map_arr)[0]
    ref_batch = _reference_forward(x_batch, pca_mean, pca_components,
                                   cluster_centers, map_arr)

    assert int(tgt_single) == int(ref_single), (tgt_single, ref_single)
    assert jnp.all(tgt_batch == ref_batch), (tgt_batch, ref_batch)
    print("KERNEL_OK")
</pallas_src>

<mosaic_0001>
module attributes {stable_mosaic.version = 11 : i64} {
  func.func @_label_generator_kernel(%arg0: i32, %arg1: memref<128x64xf32, #tpu.memory_space<vmem>>, %arg2: memref<64x128xf32, #tpu.memory_space<vmem>>, %arg3: memref<1x128xf32, #tpu.memory_space<vmem>>, %arg4: memref<1x128xf32, #tpu.memory_space<vmem>>, %arg5: memref<1x128xi32, #tpu.memory_space<vmem>>) attributes {dimension_semantics = [#tpu.dimension_semantics<parallel>], iteration_bounds = array<i64: 1>, scalar_prefetch = 0 : i64, scratch_operands = 0 : i64, tpu.core_type = #tpu.core_type<tc>, window_params = [{transform_indices = @transform_0, window_bounds = array<i64: 128, 64>}, {pipeline_mode = #tpu.pipeline_mode<synchronous>, transform_indices = @transform_1, window_bounds = array<i64: 64, 128>}, {pipeline_mode = #tpu.pipeline_mode<synchronous>, transform_indices = @transform_2, window_bounds = array<i64: 1, 128>}, {pipeline_mode = #tpu.pipeline_mode<synchronous>, transform_indices = @transform_3, window_bounds = array<i64: 1, 128>}, {transform_indices = @transform_4, window_bounds = array<i64: 1, 128>}]} {
    %c0 = arith.constant 0 : index
    %c0_0 = arith.constant 0 : index
    %0 = vector.load %arg1[%c0, %c0_0] : memref<128x64xf32, #tpu.memory_space<vmem>>, vector<128x64xf32>
    %c0_1 = arith.constant 0 : index
    %c0_2 = arith.constant 0 : index
    %1 = vector.load %arg2[%c0_1, %c0_2] : memref<64x128xf32, #tpu.memory_space<vmem>>, vector<64x128xf32>
    %cst = arith.constant dense<0.000000e+00> : vector<128x128xf32>
    %2 = tpu.matmul %0, %1, %cst {dimension_numbers = #tpu.dot_dimension_numbers<[1], [0], [0], [1], [0, 0, 1, 1], [], []>} : vector<128x64xf32>, vector<64x128xf32>, vector<128x128xf32> -> vector<128x128xf32>
    %c0_3 = arith.constant 0 : index
    %c0_4 = arith.constant 0 : index
    %3 = vector.load %arg3[%c0_3, %c0_4] : memref<1x128xf32, #tpu.memory_space<vmem>>, vector<1x128xf32>
    %4 = vector.broadcast %3 : vector<1x128xf32> to vector<128x128xf32>
    %5 = arith.addf %2, %4 : vector<128x128xf32>
    %6 = tpu.iota {dimensions = array<i32: 1>} : vector<128x128xi32>
    %cst_5 = arith.constant dense<0x7F800000> : vector<128xf32>
    %7 = vector.multi_reduction <minimumf>, %5, %cst_5 [1] : vector<128x128xf32> to vector<128xf32>
    %8 = vector.shape_cast %7 : vector<128xf32> to vector<128x1xf32>
    %9 = vector.broadcast %8 : vector<128x1xf32> to vector<128x128xf32>
    %10 = arith.cmpf ole, %5, %9 : vector<128x128xf32>
    %c128_i32 = arith.constant 128 : i32
    %11 = vector.broadcast %c128_i32 : i32 to vector<128x128xi32>
    %12 = arith.select %10, %6, %11 : vector<128x128xi1>, vector<128x128xi32>
    %cst_6 = arith.constant dense<2147483647> : vector<128xi32>
    %13 = vector.multi_reduction <minsi>, %12, %cst_6 [1] : vector<128x128xi32> to vector<128xi32>
    %14 = vector.shape_cast %13 : vector<128xi32> to vector<128x1xi32>
    %15 = vector.broadcast %14 : vector<128x1xi32> to vector<128x128xi32>
    %16 = arith.cmpi eq, %6, %15 : vector<128x128xi32>
    %17 = arith.extui %16 : vector<128x128xi1> to vector<128x128xi32>
    %18 = arith.sitofp %17 : vector<128x128xi32> to vector<128x128xf32>
    %c0_7 = arith.constant 0 : index
    %c0_8 = arith.constant 0 : index
    %19 = vector.load %arg4[%c0_7, %c0_8] : memref<1x128xf32, #tpu.memory_space<vmem>>, vector<1x128xf32>
    %cst_9 = arith.constant dense<0.000000e+00> : vector<1x128xf32>
    %20 = tpu.matmul %19, %18, %cst_9 {dimension_numbers = #tpu.dot_dimension_numbers<[1], [1], [0], [0], [0, 0, 1, 0], [], []>} : vector<1x128xf32>, vector<128x128xf32>, vector<1x128xf32> -> vector<1x128xf32>
    %21 = arith.fptosi %20 : vector<1x128xf32> to vector<1x128xi32>
    %c0_10 = arith.constant 0 : index
    %c0_11 = arith.constant 0 : index
    %22 = vector.load %arg5[%c0_10, %c0_11] : memref<1x128xi32, #tpu.memory_space<vmem>>, vector<1x128xi32>
    tpu.vector_store %arg5[%c0_10, %c0_11], %21 {strides = array<i32>} : memref<1x128xi32, #tpu.memory_space<vmem>>, vector<1x128xi32>,
    return
  }
  func.func @transform_0(%arg0: i32) -> (i32, i32) {
    %c0_i32 = arith.constant 0 : i32
    %c0_i32_0 = arith.constant 0 : i32
    return %arg0, %c0_i32 : i32, i32
  }
  func.func @transform_1(%arg0: i32) -> (i32, i32) {
    %c0_i32 = arith.constant 0 : i32
    %c0_i32_0 = arith.constant 0 : i32
    %c0_i32_1 = arith.constant 0 : i32
    return %c0_i32, %c0_i32_0 : i32, i32
  }
  func.func @transform_2(%arg0: i32) -> (i32, i32) {
    %c0_i32 = arith.constant 0 : i32
    %c0_i32_0 = arith.constant 0 : i32
    %c0_i32_1 = arith.constant 0 : i32
    return %c0_i32, %c0_i32_0 : i32, i32
  }
  func.func @transform_3(%arg0: i32) -> (i32, i32) {
    %c0_i32 = arith.constant 0 : i32
    %c0_i32_0 = arith.constant 0 : i32
    %c0_i32_1 = arith.constant 0 : i32
    return %c0_i32, %c0_i32_0 : i32, i32
  }
  func.func @transform_4(%arg0: i32) -> (i32, i32) {
    %c0_i32 = arith.constant 0 : i32
    %c0_i32_0 = arith.constant 0 : i32
    return %c0_i32, %arg0 : i32, i32
  }
}

</mosaic_0001>

<bundles_post_ra>
// kernel: tpu_custom_call.1
= control target key start
LH: loop header
LB: loop body
LE: loop exit
PB: predicated region body
PF: predicated region fallthrough
CT: control target
= control target key end

     0   :  { %vm49_vm0 = vcmask 523264   ;;  %s1278_s0 = inlined_call_operand.vmem [shape: f32[128,64], index: 0, kind: input, shape index: {}]   ;;  %s1279_s1 = inlined_call_operand.vmem [shape: f32[64,128], index: 1, kind: input, shape index: {}]   ;;  %s1280_s2 = inlined_call_operand.vmem [shape: f32[1,128], index: 2, kind: input, shape index: {}]   ;;  %s1281_s3 = inlined_call_operand.vmem [shape: f32[1,128], index: 3, kind: input, shape index: {}]   ;;  %s1282_s4 = inlined_call_operand.hbm [shape: s32[1,128], index: 4, kind: output, shape index: {}]  }
   0x1   :  { %v41_v0 = vld [vmem:[%s1279_s1 + $0x38] sm:$0xff]  ;;  %v40_v1 = vld [vmem:[%s1279_s1 + $0x30] sm:$0xff]  ;;  %v39_v2 = vld [vmem:[%s1279_s1 + $0x28] sm:$0xff] }
   0x2   :  { %758 = vmatprep.subr.mxu0 %v41_v0  ;;  %v18_v3 = vld [vmem:[%s1278_s0] sm:$0xff]  ;;  %v37_v5 = vld [vmem:[%s1279_s1 + $0x18] sm:$0xff]  ;;  %v36_v6 = vld [vmem:[%s1279_s1 + $0x10] sm:$0xff] }
   0x3   :  { %759 = vmatpush3.msra.mxu0 %v41_v0  ;;  %774 = vmatprep.mubr.msk.f32.mxu0 %vm49_vm0, %v18_v3  ;;  %v38_v4 = vld [vmem:[%s1279_s1 + $0x20] sm:$0xff] }
   0x4   :  { %760 = vmatprep.subr.mxu0 %v40_v1 }
   0x5   :  { %761 = vmatpush3.msra.mxu0 %v40_v1 }
   0x6   :  { %762 = vmatprep.subr.mxu0 %v39_v2 }
   0x7   :  { %763 = vmatpush3.msra.mxu0 %v39_v2 }
   0x8   :  { %764 = vmatprep.subr.mxu0 %v38_v4 }
   0x9   :  { %765 = vmatpush3.msra.mxu0 %v38_v4 }
   0xa   :  { %9 = vsyncpa [#allocation3], 0  ;;  %766 = vmatprep.subr.mxu0 %v37_v5  ;;  %v35_v7 = vld [vmem:[%s1279_s1 + $0x8] sm:$0xff]  ;;  %v34_v8 = vld [vmem:[%s1279_s1] sm:$0xff]  ;;  %v243_v57 = vlaneseq  ;;  %s864_s12 = smov [#allocation2]  }
   0xb   :  { %767 = vmatpush3.msra.mxu0 %v37_v5  ;;  %v19_v9 = vld [vmem:[%s1278_s0 + $0x8] sm:$0xff]  ;;  %v20_v10 = vld [vmem:[%s1278_s0 + $0x10] sm:$0xff]  ;;  %v21_v11 = vld [vmem:[%s1278_s0 + $0x18] sm:$0xff]  ;;  %s660_s1 = sshll.u32 %s864_s12, 4  ;;  %s661_s1 = int_to_ptr.vmem [resolvable:$true] %s660_s1 }
   0xc   :  { %768 = vmatprep.subr.mxu0 %v36_v6  ;;  %v22_v12 = vld [vmem:[%s1278_s0 + $0x20] sm:$0xff]  ;;  %v23_v13 = vld [vmem:[%s1278_s0 + $0x28] sm:$0xff]  ;;  %v24_v14 = vld [vmem:[%s1278_s0 + $0x30] sm:$0xff]  ;;  %v1005_v59 = vand.u32 127, %v243_v57  ;;  %s839_s13 = scalar_lea.vmem %s661_s1, 16  ;;  %s843_s14 = scalar_lea.vmem %s661_s1, 32 }
   0xd   :  { %769 = vmatpush3.msra.mxu0 %v36_v6  ;;  %v25_v15 = vld [vmem:[%s1278_s0 + $0x38] sm:$0xff]  ;;  %v26_v16 = vld [vmem:[%s1278_s0 + $0x40] sm:$0xff]  ;;  %v27_v17 = vld [vmem:[%s1278_s0 + $0x48] sm:$0xff]  ;;  %p840_p0 = scmp.ne.s32.totalorder %s661_s1, %s839_s13  ;;  %p844_p1 = scmp.lt.s32.totalorder %s661_s1, %s661_s1 }
   0xe   :  { %770 = vmatprep.subr.mxu0 %v35_v7  ;;  %v28_v18 = vld [vmem:[%s1278_s0 + $0x50] sm:$0xff]  ;;  %v29_v19 = vld [vmem:[%s1278_s0 + $0x58] sm:$0xff]  ;;  %v30_v20 = vld [vmem:[%s1278_s0 + $0x60] sm:$0xff]  ;;  %p845_p2 = scmp.lt.s32.totalorder %s843_s14, %s839_s13 }
   0xf   :  { %771 = vmatpush3.msra.mxu0 %v35_v7  ;;  %v31_v21 = vld [vmem:[%s1278_s0 + $0x68] sm:$0xff]  ;;  %v32_v22 = vld [vmem:[%s1278_s0 + $0x70] sm:$0xff]  ;;  %v33_v23 = vld [vmem:[%s1278_s0 + $0x78] sm:$0xff] }
  0x10   :  { %772 = vmatprep.subr.mxu0 %v34_v8  ;;  %v668_v36 = vld [vmem:[%s1280_s2] ss:$0 sm:$0xff]  ;;  %p846_p3 = por %p845_p2, %p844_p1 }
  0x11   :  { %773 = vmatpush3.msra.mxu0 %v34_v8 }
  0x12   :  { %775 = vmatmul.mubr.msk.f32.vlgmr.msra.gmra.mxu0 %vm49_vm0, %v19_v9  ;;  %p847_p4 = pnand %p846_p3, %p840_p0 }
  0x13   :  { %777 = vmatprep.mubr.msk.f32.mxu0 %vm49_vm0, %v20_v10 }
  0x16   :  { %778 = vmatmul.mubr.msk.f32.gmra.mxu0 %vm49_vm0, %v21_v11 }
  0x17   :  { %780 = vmatprep.mubr.msk.f32.mxu0 %vm49_vm0, %v22_v12 }
  0x1a   :  { %781 = vmatmul.mubr.msk.f32.gmra.mxu0 %vm49_vm0, %v23_v13 }
  0x1b   :  { %783 = vmatprep.mubr.msk.f32.mxu0 %vm49_vm0, %v24_v14 }
  0x1e   :  { %784 = vmatmul.mubr.msk.f32.gmra.mxu0 %vm49_vm0, %v25_v15 }
  0x1f   :  { %786 = vmatprep.mubr.msk.f32.mxu0 %vm49_vm0, %v26_v16 }
  0x22   :  { %787 = vmatmul.mubr.msk.f32.gmra.mxu0 %vm49_vm0, %v27_v17 }
  0x23   :  { %789 = vmatprep.mubr.msk.f32.mxu0 %vm49_vm0, %v28_v18 }
  0x26   :  { %790 = vmatmul.mubr.msk.f32.gmra.mxu0 %vm49_vm0, %v29_v19 }
  0x27   :  { %792 = vmatprep.mubr.msk.f32.mxu0 %vm49_vm0, %v30_v20 }
  0x2a   :  { %793 = vmatmul.mubr.msk.f32.gmra.mxu0 %vm49_vm0, %v31_v21 }
  0x2b   :  { %795 = vmatprep.mubr.msk.f32.mxu0 %vm49_vm0, %v32_v22 }
  0x2e   :  { %796 = vmatmul.mubr.msk.f32.gmra.mxu0 %vm49_vm0, %v33_v23 }
  0xd2   :  { %v776_v24 = vpop.f32.mrf.mxu0 }
  0xd3   :  { %v1002_v56 = vadd.f32 %v776_v24, %v668_v36 }
  0xd4   :  { %v164_v25 = vpop.f32.mrf.mxu0 }
  0xd5   :  { %v996_v54 = vadd.f32 %v668_v36, %v164_v25 }
  0xd6   :  { %v779_v26 = vpop.f32.mrf.mxu0 }
  0xd7   :  { %v998_v55 = vadd.f32 %v779_v26, %v668_v36 }
  0xd8   :  { %v174_v27 = vpop.f32.mrf.mxu0 }
  0xd9   :  { %v990_v52 = vadd.f32 %v668_v36, %v174_v27 }
  0xda   :  { %v782_v28 = vpop.f32.mrf.mxu0 }
  0xdb   :  { %v992_v53 = vadd.f32 %v782_v28, %v668_v36 }
  0xdc   :  { %v184_v29 = vpop.f32.mrf.mxu0 }
  0xdd   :  { %v984_v50 = vadd.f32 %v668_v36, %v184_v29 }
  0xde   :  { %v785_v30 = vpop.f32.mrf.mxu0 }
  0xdf   :  { %v986_v51 = vadd.f32 %v785_v30, %v668_v36 }
  0xe0   :  { %v194_v31 = vpop.f32.mrf.mxu0 }
  0xe1   :  { %v981_v48 = vadd.f32 %v668_v36, %v194_v31 }
  0xe2   :  { %v788_v32 = vpop.f32.mrf.mxu0 }
  0xe3   :  { %v210_v49 = vadd.f32 %v788_v32, %v668_v36 }
  0xe4   :  { %v204_v33 = vpop.f32.mrf.mxu0 }
  0xe5   :  { %v205_v46 = vadd.f32 %v668_v36, %v204_v33 }
  0xe6   :  { %v791_v34 = vpop.f32.mrf.mxu0 }
  0xe7   :  { %v220_v47 = vadd.f32 %v791_v34, %v668_v36 }
  0xe8   :  { %v214_v35 = vpop.f32.mrf.mxu0 }
  0xe9   :  { %v215_v44 = vadd.f32 %v668_v36, %v214_v35 }
  0xea   :  { %v794_v37 = vpop.f32.mrf.mxu0 }
  0xeb   :  { %v230_v38 = vadd.f32 %v794_v37, %v668_v36 }
  0xec   :  { %v224_v39 = vpop.f32.mrf.mxu0 }
  0xed   :  { %271 = vmin.xlane.f32.xlu1 %v230_v38  ;;  %v225_v41 = vadd.f32 %v668_v36, %v224_v39 }
  0xee   :  { %v797_v40 = vpop.f32.mrf.mxu0 }
  0xef   :  { %v240_v42 = vadd.f32 %v797_v40, %v668_v36 }
  0xf0   :  { %v234_v43 = vpop.f32.mrf.mxu0 }
  0xf1   :  { %275 = vmin.xlane.f32.xlu0 %v240_v42  ;;  %269 = vmin.xlane.f32.xlu1 %v225_v41  ;;  %v235_v45 = vadd.f32 %v668_v36, %v234_v43 }
  0xf5   :  { %273 = vmin.xlane.f32.xlu0 %v235_v45  ;;  %265 = vmin.xlane.f32.xlu1 %v215_v44 }
  0xf9   :  { %267 = vmin.xlane.f32.xlu0 %v220_v47  ;;  %261 = vmin.xlane.f32.xlu1 %v205_v46 }
  0xfd   :  { %263 = vmin.xlane.f32.xlu0 %v210_v49  ;;  %257 = vmin.xlane.f32.xlu1 %v981_v48 }
 0x101   :  { %259 = vmin.xlane.f32.xlu0 %v986_v51  ;;  %253 = vmin.xlane.f32.xlu1 %v984_v50 }
 0x105   :  { %255 = vmin.xlane.f32.xlu0 %v992_v53  ;;  %249 = vmin.xlane.f32.xlu1 %v990_v52 }
 0x109   :  { %251 = vmin.xlane.f32.xlu0 %v998_v55  ;;  %245 = vmin.xlane.f32.xlu1 %v996_v54 }
 0x10d   :  { %247 = vmin.xlane.f32.xlu0 %v1002_v56 }
 0x176   :  { %v272_v58 = vpop.xlane.xlu1 %271 }
 0x177   :  { %vm290_vm1 = vcmp.le.f32.partialorder %v230_v38, %v272_v58 }
 0x178   :  { %v1008_v62 = vsel %vm290_vm1, %v1005_v59, 128 }
 0x179   :  { %v492_v4 = vshra.s32 %v1008_v62, 16 }
 0x17a   :  { %v276_v60 = vpop.xlane.xlu0 %275  ;;  %v270_v61 = vpop.xlane.xlu1 %269 }
 0x17b   :  { %vm292_vm2 = vcmp.le.f32.partialorder %v240_v42, %v276_v60  ;;  %vm289_vm3 = vcmp.le.f32.partialorder %v225_v41, %v270_v61  ;;  %v1025_v10 = vcvt.s32.f32 %v492_v4  ;;  %v491_v61 = vand.u32 65535, %v1008_v62 }
 0x17c   :  { %v1011_v63 = vsel %vm292_vm2, %v1005_v59, 128  ;;  %v1018_v5 = vsel %vm289_vm3, %v1005_v59, 128 }
 0x17d   :  { %v520_v0 = vshra.s32 %v1011_v63, 16  ;;  %v478_v12 = vshra.s32 %v1018_v5, 16  ;;  %v519_v60 = vand.u32 65535, %v1011_v63  ;;  %v493_v63 = vcvt.s32.f32 %v491_v61 }
 0x17e   :  { %v274_v1 = vpop.xlane.xlu0 %273  ;;  %v266_v2 = vpop.xlane.xlu1 %265 }
 0x17f   :  { %vm291_vm4 = vcmp.le.f32.partialorder %v235_v45, %v274_v1  ;;  %v1014_v3 = vcvt.s32.f32 %v520_v0  ;;  %vm287_vm5 = vcmp.le.f32.partialorder %v215_v44, %v266_v2  ;;  %v1041_v19 = vcvt.s32.f32 %v478_v12 }
 0x180   :  { %v1021_v6 = vsel %vm291_vm4, %v1005_v59, 128  ;;  %v1031_v13 = vsel %vm287_vm5, %v1005_v59, 128  ;;  %v521_v2 = vcvt.s32.f32 %v519_v60 }
 0x181   :  { %523 = vmin.xlane.f32.xlu0 %v1014_v3  ;;  %v506_v7 = vshra.s32 %v1021_v6, 16  ;;  %v450_v20 = vshra.s32 %v1031_v13, 16  ;;  %v505_v0 = vand.u32 65535, %v1021_v6 }
 0x182   :  { %v268_v8 = vpop.xlane.xlu0 %267  ;;  %v262_v9 = vpop.xlane.xlu1 %261 }
 0x183   :  { %vm288_vm6 = vcmp.le.f32.partialorder %v220_v47, %v268_v8  ;;  %v1027_v11 = vcvt.s32.f32 %v506_v7  ;;  %vm285_vm7 = vcmp.le.f32.partialorder %v205_v46, %v262_v9  ;;  %v1057_v27 = vcvt.s32.f32 %v450_v20 }
 0x184   :  { %v1034_v14 = vsel %vm288_vm6, %v1005_v59, 128  ;;  %v1045_v21 = vsel %vm285_vm7, %v1005_v59, 128  ;;  %v477_v7 = vand.u32 65535, %v1018_v5  ;;  %v507_v62 = vcvt.s32.f32 %v505_v0 }
 0x185   :  { %495 = vmin.xlane.f32.xlu0 %v1025_v10  ;;  %509 = vmin.xlane.f32.xlu1 %v1027_v11  ;;  %v464_v15 = vshra.s32 %v1034_v14, 16  ;;  %v422_v28 = vshra.s32 %v1045_v21, 16  ;;  %v463_v8 = vand.u32 65535, %v1034_v14  ;;  %v449_v5 = vand.u32 65535, %v1031_v13 }
 0x186   :  { %v264_v16 = vpop.xlane.xlu0 %263  ;;  %v258_v17 = vpop.xlane.xlu1 %257  ;;  %v479_v20 = vcvt.s32.f32 %v477_v7  ;;  %v421_v13 = vand.u32 65535, %v1045_v21 }
 0x187   :  { %vm286_vm8 = vcmp.le.f32.partialorder %v210_v49, %v264_v16  ;;  %v1039_v18 = vcvt.s32.f32 %v464_v15  ;;  %vm283_vm9 = vcmp.le.f32.partialorder %v981_v48, %v258_v17  ;;  %v1073_v35 = vcvt.s32.f32 %v422_v28 }
 0x188   :  { %v1048_v22 = vsel %vm286_vm8, %v1005_v59, 128  ;;  %v1061_v29 = vsel %vm283_vm9, %v1005_v59, 128  ;;  %v465_v17 = vcvt.s32.f32 %v463_v8  ;;  %v451_v28 = vcvt.s32.f32 %v449_v5 }
 0x189   :  { %467 = vmin.xlane.f32.xlu0 %v1039_v18  ;;  %481 = vmin.xlane.f32.xlu1 %v1041_v19  ;;  %v436_v23 = vshra.s32 %v1048_v22, 16  ;;  %v394_v36 = vshra.s32 %v1061_v29, 16  ;;  %v435_v14 = vand.u32 65535, %v1048_v22  ;;  %v393_v21 = vand.u32 65535, %v1061_v29 }
 0x18a   :  { %v260_v24 = vpop.xlane.xlu0 %259  ;;  %v254_v25 = vpop.xlane.xlu1 %253 }
 0x18b   :  { %vm284_vm10 = vcmp.le.f32.partialorder %v986_v51, %v260_v24  ;;  %v1055_v26 = vcvt.s32.f32 %v436_v23  ;;  %vm281_vm11 = vcmp.le.f32.partialorder %v984_v50, %v254_v25  ;;  %v1089_v43 = vcvt.s32.f32 %v394_v36 }
 0x18c   :  { %v1064_v30 = vsel %vm284_vm10, %v1005_v59, 128  ;;  %v1077_v37 = vsel %vm281_vm11, %v1005_v59, 128  ;;  %v437_v25 = vcvt.s32.f32 %v435_v14  ;;  %v423_v36 = vcvt.s32.f32 %v421_v13 }
 0x18d   :  { %439 = vmin.xlane.f32.xlu0 %v1055_v26  ;;  %453 = vmin.xlane.f32.xlu1 %v1057_v27  ;;  %v408_v31 = vshra.s32 %v1064_v30, 16  ;;  %v366_v44 = vshra.s32 %v1077_v37, 16  ;;  %v407_v22 = vand.u32 65535, %v1064_v30  ;;  %v365_v29 = vand.u32 65535, %v1077_v37 }
 0x18e   :  { %v256_v32 = vpop.xlane.xlu0 %255  ;;  %v250_v33 = vpop.xlane.xlu1 %249 }
 0x18f   :  { %vm282_vm12 = vcmp.le.f32.partialorder %v992_v53, %v256_v32  ;;  %v1071_v34 = vcvt.s32.f32 %v408_v31  ;;  %vm279_vm13 = vcmp.le.f32.partialorder %v990_v52, %v250_v33  ;;  %v1105_v50 = vcvt.s32.f32 %v366_v44 }
 0x190   :  { %v1080_v38 = vsel %vm282_vm12, %v1005_v59, 128  ;;  %v1093_v45 = vsel %vm279_vm13, %v1005_v59, 128  ;;  %v409_v33 = vcvt.s32.f32 %v407_v22  ;;  %v395_v44 = vcvt.s32.f32 %v393_v21 }
 0x191   :  { %411 = vmin.xlane.f32.xlu0 %v1071_v34  ;;  %425 = vmin.xlane.f32.xlu1 %v1073_v35  ;;  %v380_v39 = vshra.s32 %v1080_v38, 16  ;;  %v338_v51 = vshra.s32 %v1093_v45, 16  ;;  %v379_v30 = vand.u32 65535, %v1080_v38  ;;  %v337_v37 = vand.u32 65535, %v1093_v45 }
 0x192   :  { %v252_v40 = vpop.xlane.xlu0 %251  ;;  %v246_v41 = vpop.xlane.xlu1 %245 }
 0x193   :  { %vm280_vm14 = vcmp.le.f32.partialorder %v998_v55, %v252_v40  ;;  %v1087_v42 = vcvt.s32.f32 %v380_v39  ;;  %vm277_vm15 = vcmp.le.f32.partialorder %v996_v54, %v246_v41  ;;  %v381_v41 = vcvt.s32.f32 %v379_v30 }
 0x194   :  { %v1096_v46 = vsel %vm280_vm14, %v1005_v59, 128  ;;  %v1109_v52 = vsel %vm277_vm15, %v1005_v59, 128  ;;  %v339_v0 = vcvt.s32.f32 %v337_v37 }
 0x195   :  { %383 = vmin.xlane.f32.xlu0 %v1087_v42  ;;  %397 = vmin.xlane.f32.xlu1 %v1089_v43  ;;  %v352_v47 = vshra.s32 %v1096_v46, 16  ;;  %v310_v57 = vshra.s32 %v1109_v52, 16  ;;  %v351_v38 = vand.u32 65535, %v1096_v46  ;;  %v309_v45 = vand.u32 65535, %v1109_v52 }
 0x196   :  { %v248_v48 = vpop.xlane.xlu0 %247 }
 0x197   :  { %vm278_vm0 = vcmp.le.f32.partialorder %v1002_v56, %v248_v48  ;;  %v1103_v49 = vcvt.s32.f32 %v352_v47  ;;  %v1119_v56 = vcvt.s32.f32 %v338_v51  ;;  %v1124_v58 = vcvt.s32.f32 %v310_v57 }
 0x198   :  { %v1112_v53 = vsel %vm278_vm0, %v1005_v59, 128  ;;  %v861_v47 = vmov 0.0   ;;  %v367_v57 = vcvt.s32.f32 %v365_v29 }
 0x199   :  { %355 = vmin.xlane.f32.xlu0 %v1103_v49  ;;  %369 = vmin.xlane.f32.xlu1 %v1105_v50  ;;  %v324_v54 = vshra.s32 %v1112_v53, 16  ;;  %v323_v46 = vand.u32 65535, %v1112_v53 }
 0x19a   :  { %798 = vmatprep.subr.mxu1 %v861_v47 }
 0x19b   :  { %v1117_v55 = vcvt.s32.f32 %v324_v54  ;;  %v353_v54 = vcvt.s32.f32 %v351_v38  ;;  %v325_v61 = vcvt.s32.f32 %v323_v46 }
 0x19d   :  { %327 = vmin.xlane.f32.xlu0 %v1117_v55  ;;  %341 = vmin.xlane.f32.xlu1 %v1119_v56 }
 0x1a1   :  { %313 = vmin.xlane.f32.xlu1 %v1124_v58 }
 0x20a   :  { %v1130_v1 = vpop.xlane.xlu0 %523 }
 0x20b   :  { %vm525_vm1 = vcmp.eq.f32.partialorder %v1014_v3, %v1130_v1 }
 0x20c   :  { %v526_v4 = vsel %vm525_vm1, %v521_v2, inf  ;;  %vm862_vm1 = vmmov 0  }
 0x20d   :  { %527 = vmin.xlane.f32.xlu0 %v526_v4  ;;  %v311_v4 = vcvt.s32.f32 %v309_v45  ;;  %830 = vmatprep.mubr.msk.f32.mxu1 %vm862_vm1, %v861_v47 }
 0x20e   :  { %v1136_v9 = vpop.xlane.xlu0 %495  ;;  %v1138_v12 = vpop.xlane.xlu1 %509 }
 0x20f   :  { %vm497_vm2 = vcmp.eq.f32.partialorder %v1025_v10, %v1136_v9  ;;  %vm511_vm3 = vcmp.eq.f32.partialorder %v1027_v11, %v1138_v12 }
 0x210   :  { %v498_v6 = vsel %vm497_vm2, %v493_v63, inf  ;;  %v512_v3 = vsel %vm511_vm3, %v507_v62, inf  ;;  %v502_v62 = vcvt.f32.s32 %v1136_v9 }
 0x211   :  { %499 = vmin.xlane.f32.xlu0 %v498_v6  ;;  %513 = vmin.xlane.f32.xlu1 %v512_v3 }
 0x212   :  { %v1146_v15 = vpop.xlane.xlu0 %467  ;;  %v1148_v16 = vpop.xlane.xlu1 %481 }
 0x213   :  { %vm469_vm4 = vcmp.eq.f32.partialorder %v1039_v18, %v1146_v15  ;;  %vm483_vm5 = vcmp.eq.f32.partialorder %v1041_v19, %v1148_v16 }
 0x214   :  { %v470_v10 = vsel %vm469_vm4, %v465_v17, inf  ;;  %v484_v11 = vsel %vm483_vm5, %v479_v20, inf  ;;  %v863_v20 = vmov 1.0  }
 0x215   :  { %471 = vmin.xlane.f32.xlu0 %v470_v10  ;;  %485 = vmin.xlane.f32.xlu1 %v484_v11  ;;  %v503_v10 = vshll.u32 %v502_v62, 16 }
 0x216   :  { %v1156_v23 = vpop.xlane.xlu0 %439  ;;  %v1158_v24 = vpop.xlane.xlu1 %453 }
 0x217   :  { %vm441_vm6 = vcmp.eq.f32.partialorder %v1055_v26, %v1156_v23  ;;  %vm455_vm7 = vcmp.eq.f32.partialorder %v1057_v27, %v1158_v24  ;;  %v460_v30 = vcvt.f32.s32 %v1158_v24 }
 0x218   :  { %v442_v18 = vsel %vm441_vm6, %v437_v25, inf  ;;  %v456_v19 = vsel %vm455_vm7, %v451_v28, inf  ;;  %v474_v25 = vcvt.f32.s32 %v1146_v15 }
 0x219   :  { %443 = vmin.xlane.f32.xlu0 %v442_v18  ;;  %457 = vmin.xlane.f32.xlu1 %v456_v19 }
 0x21a   :  { %v1166_v31 = vpop.xlane.xlu0 %411  ;;  %v1168_v32 = vpop.xlane.xlu1 %425  ;;  %v475_v21 = vshll.u32 %v474_v25, 16 }
 0x21b   :  { %vm413_vm8 = vcmp.eq.f32.partialorder %v1071_v34, %v1166_v31  ;;  %vm427_vm9 = vcmp.eq.f32.partialorder %v1073_v35, %v1168_v32  ;;  %v418_v37 = vcvt.f32.s32 %v1166_v31 }
 0x21c   :  { %v414_v26 = vsel %vm413_vm8, %v409_v33, inf  ;;  %v428_v27 = vsel %vm427_vm9, %v423_v36, inf }
 0x21d   :  { %415 = vmin.xlane.f32.xlu0 %v414_v26  ;;  %429 = vmin.xlane.f32.xlu1 %v428_v27  ;;  %v446_v26 = vcvt.f32.s32 %v1156_v23  ;;  %v461_v27 = vshll.u32 %v460_v30, 16 }
 0x21e   :  { %v1176_v39 = vpop.xlane.xlu0 %383  ;;  %v1178_v40 = vpop.xlane.xlu1 %397 }
 0x21f   :  { %vm385_vm10 = vcmp.eq.f32.partialorder %v1087_v42, %v1176_v39  ;;  %vm399_vm11 = vcmp.eq.f32.partialorder %v1089_v43, %v1178_v40  ;;  %v447_v24 = vshll.u32 %v446_v26, 16 }
 0x220   :  { %v386_v34 = vsel %vm385_vm10, %v381_v41, inf  ;;  %v400_v35 = vsel %vm399_vm11, %v395_v44, inf  ;;  %v432_v44 = vcvt.f32.s32 %v1168_v32  ;;  %v419_v32 = vshll.u32 %v418_v37, 16 }
 0x221   :  { %387 = vmin.xlane.f32.xlu0 %v386_v34  ;;  %401 = vmin.xlane.f32.xlu1 %v400_v35 }
 0x222   :  { %v1187_v48 = vpop.xlane.xlu0 %355  ;;  %v1189_v51 = vpop.xlane.xlu1 %369  ;;  %v433_v46 = vshll.u32 %v432_v44, 16 }
 0x223   :  { %vm357_vm12 = vcmp.eq.f32.partialorder %v1103_v49, %v1187_v48  ;;  %vm371_vm13 = vcmp.eq.f32.partialorder %v1105_v50, %v1189_v51 }
 0x224   :  { %v358_v42 = vsel %vm357_vm12, %v353_v54, inf  ;;  %v372_v43 = vsel %vm371_vm13, %v367_v57, inf }
 0x225   :  { %359 = vmin.xlane.f32.xlu0 %v358_v42  ;;  %373 = vmin.xlane.f32.xlu1 %v372_v43  ;;  %v404_v43 = vcvt.f32.s32 %v1178_v40 }
 0x226   :  { %v1196_v60 = vpop.xlane.xlu0 %327  ;;  %v1198_v53 = vpop.xlane.xlu1 %341 }
 0x227   :  { %vm329_vm14 = vcmp.eq.f32.partialorder %v1117_v55, %v1196_v60  ;;  %vm343_vm15 = vcmp.eq.f32.partialorder %v1119_v56, %v1198_v53  ;;  %v530_v55 = vcvt.f32.s32 %v1130_v1  ;;  %v516_v56 = vcvt.f32.s32 %v1138_v12 }
 0x228   :  { %v330_v49 = vsel %vm329_vm14, %v325_v61, inf  ;;  %v344_v50 = vsel %vm343_vm15, %v339_v0, inf  ;;  %v488_v1 = vcvt.f32.s32 %v1148_v16  ;;  %v390_v0 = vcvt.f32.s32 %v1176_v39 }
 0x229   :  { %331 = vmin.xlane.f32.xlu0 %v330_v49  ;;  %345 = vmin.xlane.f32.xlu1 %v344_v50  ;;  %v531_v8 = vshll.u32 %v530_v55, 16  ;;  %v517_v14 = vshll.u32 %v516_v56, 16  ;;  %v405_v49 = vshll.u32 %v404_v43, 16  ;;  %v376_v55 = vcvt.f32.s32 %v1189_v51 }
 0x22a   :  { %v1204_v2 = vpop.xlane.xlu1 %313  ;;  %v489_v28 = vshll.u32 %v488_v1, 16  ;;  %v391_v40 = vshll.u32 %v390_v0, 16  ;;  %v362_v56 = vcvt.f32.s32 %v1187_v48 }
 0x22b   :  { %vm315_vm0 = vcmp.eq.f32.partialorder %v1124_v58, %v1204_v2 }
 0x22c   :  { %v316_v52 = vsel %vm315_vm0, %v311_v4, inf  ;;  %v363_v51 = vshll.u32 %v362_v56, 16 }
 0x22d   :  { %317 = vmin.xlane.f32.xlu1 %v316_v52 }
 0x296   :  { %v528_v7 = vpop.xlane.xlu0 %527 }
 0x297   :  { %v529_v63 = vcvt.f32.s32 %v528_v7 }
 0x299   :  { %v532_v6 = vadd.s32 %v531_v8, %v529_v63  ;;  %v377_v63 = vshll.u32 %v376_v55, 16 }
 0x29a   :  { %v500_v3 = vpop.xlane.xlu0 %499  ;;  %v514_v5 = vpop.xlane.xlu1 %513 }
 0x29b   :  { %v501_v17 = vcvt.f32.s32 %v500_v3  ;;  %v515_v58 = vcvt.f32.s32 %v514_v5  ;;  %vm548_vm2 = vcmp.eq.s32.totalorder %v1005_v59, %v532_v6  ;;  %v348_v5 = vcvt.f32.s32 %v1198_v53 }
 0x29c   :  { %799 = vmatpush3.xpose.msk.msra.mxu1 %vm548_vm2, %v863_v20 }
 0x29d   :  { %v518_v11 = vadd.s32 %v517_v14, %v515_v58  ;;  %800 = vmatprep.subr.mxu1 %v861_v47  ;;  %v504_v13 = vadd.s32 %v503_v10, %v501_v17  ;;  %v334_v58 = vcvt.f32.s32 %v1196_v60  ;;  %v349_v10 = vshll.u32 %v348_v5, 16 }
 0x29e   :  { %v486_v12 = vpop.xlane.xlu1 %485  ;;  %v472_v22 = vpop.xlane.xlu0 %471 }
 0x29f   :  { %v487_v9 = vcvt.f32.s32 %v486_v12  ;;  %vm547_vm3 = vcmp.eq.s32.totalorder %v1005_v59, %v518_v11  ;;  %v473_v18 = vcvt.f32.s32 %v472_v22  ;;  %vm546_vm4 = vcmp.eq.s32.totalorder %v1005_v59, %v504_v13 }
 0x2a0   :  { %801 = vmatpush3.xpose.msk.msra.mxu1 %vm547_vm3, %v863_v20  ;;  %v335_v53 = vshll.u32 %v334_v58, 16  ;;  %v320_v13 = vcvt.f32.s32 %v1204_v2  ;;  %v581_v2 = vld [vmem:[%s1281_s3] sm:$0x1] }
 0x2a1   :  { %802 = vmatprep.subr.mxu1 %v861_v47  ;;  %v490_v19 = vadd.s32 %v489_v28, %v487_v9  ;;  %v476_v33 = vadd.s32 %v475_v21, %v473_v18 }
 0x2a2   :  { %v458_v16 = vpop.xlane.xlu1 %457  ;;  %v444_v15 = vpop.xlane.xlu0 %443  ;;  %v321_v60 = vshll.u32 %v320_v13, 16 }
 0x2a3   :  { %v459_v36 = vcvt.f32.s32 %v458_v16  ;;  %vm545_vm5 = vcmp.eq.s32.totalorder %v1005_v59, %v490_v19  ;;  %v445_v29 = vcvt.f32.s32 %v444_v15  ;;  %vm544_vm6 = vcmp.eq.s32.totalorder %v1005_v59, %v476_v33 }
 0x2a4   :  { %803 = vmatpush3.xpose.msk.msra.mxu1 %vm546_vm4, %v863_v20 }
 0x2a5   :  { %804 = vmatprep.subr.mxu1 %v861_v47  ;;  %v462_v38 = vadd.s32 %v461_v27, %v459_v36  ;;  %v448_v34 = vadd.s32 %v447_v24, %v445_v29 }
 0x2a6   :  { %v430_v41 = vpop.xlane.xlu1 %429  ;;  %v416_v23 = vpop.xlane.xlu0 %415 }
 0x2a7   :  { %v431_v35 = vcvt.f32.s32 %v430_v41  ;;  %vm543_vm7 = vcmp.eq.s32.totalorder %v1005_v59, %v462_v38  ;;  %v417_v54 = vcvt.f32.s32 %v416_v23  ;;  %vm542_vm8 = vcmp.eq.s32.totalorder %v1005_v59, %v448_v34 }
 0x2a8   :  { %805 = vmatpush3.xpose.msk.msra.mxu1 %vm545_vm5, %v863_v20 }
 0x2a9   :  { %806 = vmatprep.subr.mxu1 %v861_v47  ;;  %v434_v57 = vadd.s32 %v433_v46, %v431_v35  ;;  %v420_v45 = vadd.s32 %v419_v32, %v417_v54 }
 0x2aa   :  { %v402_v42 = vpop.xlane.xlu1 %401  ;;  %v388_v31 = vpop.xlane.xlu0 %387 }
 0x2ab   :  { %v403_v61 = vcvt.f32.s32 %v402_v42  ;;  %vm541_vm9 = vcmp.eq.s32.totalorder %v1005_v59, %v434_v57  ;;  %v389_v50 = vcvt.f32.s32 %v388_v31  ;;  %vm540_vm10 = vcmp.eq.s32.totalorder %v1005_v59, %v420_v45 }
 0x2ac   :  { %807 = vmatpush3.xpose.msk.msra.mxu1 %vm544_vm6, %v863_v20 }
 0x2ad   :  { %808 = vmatprep.subr.mxu1 %v861_v47  ;;  %v406_v4 = vadd.s32 %v405_v49, %v403_v61  ;;  %v392_v7 = vadd.s32 %v391_v40, %v389_v50 }
 0x2ae   :  { %v374_v52 = vpop.xlane.xlu1 %373  ;;  %v360_v39 = vpop.xlane.xlu0 %359 }
 0x2af   :  { %v375_v8 = vcvt.f32.s32 %v374_v52  ;;  %vm539_vm11 = vcmp.eq.s32.totalorder %v1005_v59, %v406_v4  ;;  %v361_v62 = vcvt.f32.s32 %v360_v39  ;;  %vm538_vm12 = vcmp.eq.s32.totalorder %v1005_v59, %v392_v7 }
 0x2b0   :  { %809 = vmatpush3.xpose.msk.msra.mxu1 %vm543_vm7, %v863_v20 }
 0x2b1   :  { %810 = vmatprep.subr.mxu1 %v861_v47  ;;  %v378_v6 = vadd.s32 %v377_v63, %v375_v8  ;;  %v364_v14 = vadd.s32 %v363_v51, %v361_v62 }
 0x2b2   :  { %v346_v3 = vpop.xlane.xlu1 %345  ;;  %v332_v48 = vpop.xlane.xlu0 %331 }
 0x2b3   :  { %v347_v17 = vcvt.f32.s32 %v346_v3  ;;  %vm537_vm13 = vcmp.eq.s32.totalorder %v1005_v59, %v378_v6  ;;  %v333_v1 = vcvt.f32.s32 %v332_v48  ;;  %vm536_vm14 = vcmp.eq.s32.totalorder %v1005_v59, %v364_v14 }
 0x2b4   :  { %811 = vmatpush3.xpose.msk.msra.mxu1 %vm542_vm8, %v863_v20 }
 0x2b5   :  { %812 = vmatprep.subr.mxu1 %v861_v47  ;;  %v350_v11 = vadd.s32 %v349_v10, %v347_v17  ;;  %v336_v9 = vadd.s32 %v335_v53, %v333_v1 }
 0x2b6   :  { %v318_v12 = vpop.xlane.xlu1 %317 }
 0x2b7   :  { %v319_v22 = vcvt.f32.s32 %v318_v12  ;;  %vm535_vm15 = vcmp.eq.s32.totalorder %v1005_v59, %v350_v11  ;;  %vm534_vm0 = vcmp.eq.s32.totalorder %v1005_v59, %v336_v9 }
 0x2b8   :  { %813 = vmatpush3.xpose.msk.msra.mxu1 %vm541_vm9, %v863_v20 }
 0x2b9   :  { %814 = vmatprep.subr.mxu1 %v861_v47  ;;  %v322_v25 = vadd.s32 %v321_v60, %v319_v22 }
 0x2bb   :  { %vm533_vm1 = vcmp.eq.s32.totalorder %v1005_v59, %v322_v25 }
 0x2bc   :  { %815 = vmatpush3.xpose.msk.msra.mxu1 %vm540_vm10, %v863_v20 }
 0x2bd   :  { %816 = vmatprep.subr.mxu1 %v861_v47 }
 0x2c0   :  { %817 = vmatpush3.xpose.msk.msra.mxu1 %vm539_vm11, %v863_v20 }
 0x2c1   :  { %818 = vmatprep.subr.mxu1 %v861_v47 }
 0x2c4   :  { %819 = vmatpush3.xpose.msk.msra.mxu1 %vm538_vm12, %v863_v20 }
 0x2c5   :  { %820 = vmatprep.subr.mxu1 %v861_v47 }
 0x2c8   :  { %821 = vmatpush3.xpose.msk.msra.mxu1 %vm537_vm13, %v863_v20 }
 0x2c9   :  { %822 = vmatprep.subr.mxu1 %v861_v47 }
 0x2cc   :  { %823 = vmatpush3.xpose.msk.msra.mxu1 %vm536_vm14, %v863_v20 }
 0x2cd   :  { %824 = vmatprep.subr.mxu1 %v861_v47 }
 0x2d0   :  { %825 = vmatpush3.xpose.msk.msra.mxu1 %vm535_vm15, %v863_v20 }
 0x2d1   :  { %826 = vmatprep.subr.mxu1 %v861_v47 }
 0x2d4   :  { %827 = vmatpush3.xpose.msk.msra.mxu1 %vm534_vm0, %v863_v20 }
 0x2d5   :  { %828 = vmatprep.subr.mxu1 %v861_v47 }
 0x2d8   :  { %829 = vmatpush3.xpose.msk.msra.mxu1 %vm533_vm1, %v863_v20 }
 0x2db   :  { %831 = vmatmul.mubr.f32.vlgmr.msra.gmra.mxu1 %v581_v2 }
 0x39b   :  { %v648_v28 = vpop.f32.mrf.mxu1 }
 0x39c   :  { %v833_v18 = vtrunc.f32 %v648_v28 }
 0x39d   :  { %v832_v19 = vpop.f32.mrf.mxu1 }
 0x39e   :  { %v834_v16 = vcvt.f32.s32 %v833_v18 }
 0x3a0   :  { %653 = vst [vmem:[#allocation2] sm:$0x1] %v834_v16 }
 0x3a1   :  { %850 = shalt.err (!%p847_p4)
}
 0x3a2   :  { %663 = dma.vmem_to_hbm [thread:$0]  %s661_s1, 16, %s1282_s4, [#allocation3]  }
 0x3a3   :  { %859 = dma.done.wait [#allocation3], 16  }
 0x3a4   :  { %860 = vsyncadd [#allocation3], 4294967280 }
 0x3a5   :  { %667 = vsyncpa [#allocation3], 1 }

</bundles_post_ra>
